<compile_context>
chip_gen: v7x
topology: tpu7x:2x2x1
jax: 0.10.0
libtpu: 0.0.40
codegen_flags: <defaults>
</compile_context>

<pallas_src>
import functools

import jax
import jax.numpy as jnp
from jax.experimental import pallas as pl
from jax.experimental.pallas import tpu as pltpu


# ----------------------------------------------------------------------------
# Kernel: one (batch-group, L-tile) step of the full TemporalBlock forward.
# Ref order: inputs [x, w1, b1, w2, b2, (wd, bd)], outputs [out],
#            scratch [(x_halo, h1_halo)].
# ----------------------------------------------------------------------------
def _temporal_block_kernel(*refs, K, dilation, padding, T, NB, Cin, Cout,
                           use_downsample, has_halo, per_tap1, per_tap2):
    x_ref, w1_ref, b1_ref, w2_ref, b2_ref = refs[:5]
    i = 5
    if use_downsample:
        wd_ref, bd_ref = refs[i:i + 2]
        i += 2
    out_ref = refs[i]
    i += 1
    if has_halo:
        xh_ref, h1h_ref = refs[i:i + 2]

    j = pl.program_id(1)          # L-tile index (sequential / "arbitrary")
    d, p = dilation, padding
    f32, bf16 = jnp.float32, jnp.bfloat16

    # At the first L tile of every batch group the carried halos are the causal
    # zero padding of conv1 / conv2.
    if has_halo:
        @pl.when(j == 0)
        def _():
            xh_ref[...] = jnp.zeros_like(xh_ref)
            h1h_ref[...] = jnp.zeros_like(h1h_ref)

    w1 = w1_ref[...]              # (Cout, K*Cin)   bf16
    b1 = b1_ref[...]              # (Cout, 1)       f32
    w2 = w2_ref[...]              # (Cout, K*Cout)  bf16
    b2 = b2_ref[...]
    if use_downsample:
        wd = wd_ref[...]          # (Cout, Cin)     bf16
        bd = bd_ref[...]

    def conv_relu(win, wm, bias, c_in, per_tap):
        # win: (c_in, T + p) bf16; wm: (Cout, K*c_in) bf16 -> (Cout, T) f32
        if per_tap:
            # Large channels: contraction already fills the MXU; accumulate per
            # tap and skip the im2col slab copy.
            acc = jnp.dot(wm[:, :c_in], win[:, 0:T], preferred_element_type=f32)
            for k in range(1, K):
                acc = acc + jnp.dot(wm[:, k * c_in:(k + 1) * c_in],
                                    win[:, k * d:k * d + T],
                                    preferred_element_type=f32)
        else:
            # Small channels: fuse the K taps into one matmul (contraction K*c_in).
            slab = jnp.concatenate([win[:, k * d:k * d + T] for k in range(K)],
                                   axis=0)                       # (K*c_in, T)
            acc = jnp.dot(wm, slab, preferred_element_type=f32)
        return jnp.maximum(acc + bias, 0.0)

    for b in range(NB):                       # NB is small & static
        xb = x_ref[b]                          # (Cin, T) f32
        xb_bf = xb.astype(bf16)

        # ---- conv1 over [x_halo | x_block] ----
        if p > 0:
            xh = xh_ref[b] if has_halo else jnp.zeros((Cin, p), bf16)
            xwin = jnp.concatenate([xh, xb_bf], axis=-1)         # (Cin, T+p)
        else:
            xwin = xb_bf
        h1 = conv_relu(xwin, w1, b1, Cin, per_tap1)              # (Cout, T) f32
        h1_bf = h1.astype(bf16)

        # ---- conv2 over [h1_halo | h1] ----
        if p > 0:
            h1h = h1h_ref[b] if has_halo else jnp.zeros((Cout, p), bf16)
            h1win = jnp.concatenate([h1h, h1_bf], axis=-1)       # (Cout, T+p)
        else:
            h1win = h1_bf
        h2 = conv_relu(h1win, w2, b2, Cout, per_tap2)            # (Cout, T) f32

        # ---- residual branch from the same block (no extra HBM input) ----
        if use_downsample:
            res = jnp.dot(wd, xb_bf, preferred_element_type=f32) + bd
        else:
            res = xb                                              # Cin == Cout, f32

        out_ref[b] = jnp.maximum(h2 + res, 0.0)                  # lane-dense store

        # ---- carry the last `padding` columns into the next tile ----
        if has_halo:
            xh_ref[b] = xb_bf[:, T - p:]
            h1h_ref[b] = h1_bf[:, T - p:]


# ----------------------------------------------------------------------------
# Wrapper: tiling choice, layout plumbing, pallas_call
# ----------------------------------------------------------------------------
def _largest_divisor_leq(n, cap):
    cap = max(1, min(n, cap))
    for c in range(cap, 0, -1):
        if n % c == 0:
            return c
    return 1


def temporal_block_forward(x, params, *, kernel_size, dilation, padding,
                           tile_l=1024):
    """x: (N, Cin, L) float32. Returns (N, Cout, L) float32."""
    N, Cin, L = x.shape
    w1, b1, w2, b2 = params["w1"], params["b1"], params["w2"], params["b2"]
    wd, bd = params.get("wd"), params.get("bd")
    Cout = w1.shape[0]
    K = kernel_size
    p = padding
    assert p == dilation * (K - 1), "residual add requires causal padding"
    use_downsample = wd is not None
    if not use_downsample:
        assert Cin == Cout, "identity residual requires n_inputs == n_outputs"

    f32, bf16 = jnp.float32, jnp.bfloat16
    ceil_to = lambda a, m: -(-a // m) * m

    # ---- lane-dense tile length (multiple of 128, >= padding for halo carry) ----
    T = min(ceil_to(L, 128), ceil_to(max(tile_l, 128), 128))
    T_min = max(128, ceil_to(max(p, 1), 128))
    T = max(T, T_min)

    def _vmem_est(T_, NB_):
        blk_in = NB_ * Cin * T_ * 4
        blk_out = NB_ * Cout * T_ * 4
        wbytes = (Cout * K * Cin + Cout * K * Cout
                  + (Cout * Cin if use_downsample else 0)) * 2 + 4 * Cout * 4
        halo = NB_ * (Cin + Cout) * max(p, 1) * 2
        live = NB_ * (Cin * (T_ + p) * 2 + K * Cin * T_ * 2 + K * Cout * T_ * 2
                      + Cout * (T_ + p) * 2 + 3 * Cout * T_ * 4)
        return 2 * (blk_in + blk_out + wbytes) + halo + live + (2 << 20)

    # Per-generation VMEM cap: ~70% of per-core VMEM (leaves double-buffer /
    # compiler-scratch headroom on v7x's 64 MiB; lets v5e/v6e use their 128 MiB).
    try:
        cap = int(pltpu.get_tpu_info().vmem_capacity_bytes) * 7 // 10
    except Exception:
        cap = 48 << 20
    cap = max(cap, 24 << 20)
    while T > T_min and _vmem_est(T, 1) > cap:
        T -= 128

    n_tiles = -(-L // T)
    Lr = n_tiles * T
    has_halo = (p > 0) and (n_tiles > 1)

    # Batch elements per grid step; keep G = N // NB >= 2 when possible so the
    # "parallel" axis can still be sharded across the two v7x TensorCores.
    nb_cap = max(1, 512 // T)
    if N >= 2:
        nb_cap = max(1, min(nb_cap, N // 2))
    NB = _largest_divisor_leq(N, nb_cap)
    G = N // NB

    x = x.astype(f32)
    if Lr != L:
        x = jnp.pad(x, ((0, 0), (0, 0), (0, Lr - L)))            # (N, Cin, Lr)

    # Per-tap weights flattened (tap k at column block k), bf16 for the MXU.
    w1m = jnp.transpose(w1, (0, 2, 1)).reshape(Cout, K * Cin).astype(bf16)
    w2m = jnp.transpose(w2, (0, 2, 1)).reshape(Cout, K * Cout).astype(bf16)
    b1c = b1.reshape(Cout, 1).astype(f32)
    b2c = b2.reshape(Cout, 1).astype(f32)

    inputs = [x, w1m, b1c, w2m, b2c]
    in_specs = [
        pl.BlockSpec((NB, Cin, T), lambda g, j: (g, 0, j)),
        pl.BlockSpec((Cout, K * Cin), lambda g, j: (0, 0)),
        pl.BlockSpec((Cout, 1), lambda g, j: (0, 0)),
        pl.BlockSpec((Cout, K * Cout), lambda g, j: (0, 0)),
        pl.BlockSpec((Cout, 1), lambda g, j: (0, 0)),
    ]
    if use_downsample:
        inputs += [wd.astype(bf16), bd.reshape(Cout, 1).astype(f32)]
        in_specs += [pl.BlockSpec((Cout, Cin), lambda g, j: (0, 0)),
                     pl.BlockSpec((Cout, 1), lambda g, j: (0, 0))]

    scratch_shapes = []
    if has_halo:
        scratch_shapes = [pltpu.VMEM((NB, Cin, p), bf16),    # carried x halo
                          pltpu.VMEM((NB, Cout, p), bf16)]   # carried h1 halo

    per_tap1 = Cin >= 128
    per_tap2 = Cout >= 128

    kernel = functools.partial(
        _temporal_block_kernel, K=K, dilation=dilation, padding=p, T=T, NB=NB,
        Cin=Cin, Cout=Cout, use_downsample=use_downsample, has_halo=has_halo,
        per_tap1=per_tap1, per_tap2=per_tap2)

    vmem_limit = int(min(max(_vmem_est(T, NB) * 5 // 4, 16 << 20), cap))

    out = pl.pallas_call(
        kernel,
        out_shape=jax.ShapeDtypeStruct((N, Cout, Lr), f32),
        grid_spec=pltpu.PrefetchScalarGridSpec(
            num_scalar_prefetch=0,
            grid=(G, n_tiles),
            in_specs=in_specs,
            out_specs=pl.BlockSpec((NB, Cout, T), lambda g, j: (g, 0, j)),
            scratch_shapes=scratch_shapes),
        compiler_params=pltpu.CompilerParams(
            dimension_semantics=("parallel", "arbitrary"),
            vmem_limit_bytes=vmem_limit),
    )(*inputs)

    return out if Lr == L else out[:, :, :L]


# ----------------------------------------------------------------------------
# Deterministic parameter construction (matches module __init__ shapes)
# ----------------------------------------------------------------------------
def _kaiming_normal(key, shape, fan_in):
    std = jnp.sqrt(2.0 / fan_in)
    return std * jax.random.normal(key, shape, dtype=jnp.float32)


def _apply_weight_norm(v, g):
    # PyTorch weight_norm default dim=0: norm over all dims except out-channel
    norm = jnp.sqrt(jnp.sum(v * v, axis=(1, 2), keepdims=True))
    return g[:, None, None] * v / norm


def make_params(key, n_inputs, n_outputs, kernel_size):
    k1, k2, k3 = jax.random.split(key, 3)
    v1 = _kaiming_normal(k1, (n_outputs, n_inputs, kernel_size), n_inputs * kernel_size)
    v2 = _kaiming_normal(k2, (n_outputs, n_outputs, kernel_size), n_outputs * kernel_size)
    # weight_norm init: g = ||v||  =>  effective weight == v
    g1 = jnp.sqrt(jnp.sum(v1 * v1, axis=(1, 2)))
    g2 = jnp.sqrt(jnp.sum(v2 * v2, axis=(1, 2)))
    params = {
        "w1": _apply_weight_norm(v1, g1),
        "b1": jnp.zeros((n_outputs,), jnp.float32),
        "w2": _apply_weight_norm(v2, g2),
        "b2": jnp.zeros((n_outputs,), jnp.float32),
    }
    if n_inputs != n_outputs:
        wdk = _kaiming_normal(k3, (n_outputs, n_inputs, 1), n_inputs * 1)
        params["wd"] = wdk[:, :, 0]                     # (Cout, Cin)
        params["bd"] = jnp.zeros((n_outputs,), jnp.float32)
    return params


# ----------------------------------------------------------------------------
# Pure-JAX reference.  Conv inputs/weights are rounded to bf16 (accumulation
# in f32) to mirror the kernel's MXU precision, so the comparison is tight.
# ----------------------------------------------------------------------------
def reference_forward(x, params, *, kernel_size, dilation, padding,
                      mxu_dtype=jnp.bfloat16):
    f32 = jnp.float32

    def q(a):
        return a.astype(mxu_dtype).astype(f32)

    def causal_dconv(inp, w, b):
        xp = jnp.pad(inp, ((0, 0), (0, 0), (padding, 0)))
        out = jax.lax.conv_general_dilated(
            q(xp), q(w), window_strides=(1,), padding="VALID",
            rhs_dilation=(dilation,), dimension_numbers=("NCH", "OIH", "NCH"))
        return out + b[None, :, None]

    h1 = jax.nn.relu(causal_dconv(x, params["w1"], params["b1"]))
    h2 = jax.nn.relu(causal_dconv(h1, params["w2"], params["b2"]))
    if "wd" in params:
        res = jax.lax.conv_general_dilated(
            q(x), q(params["wd"][:, :, None]), window_strides=(1,),
            padding="VALID", dimension_numbers=("NCH", "OIH", "NCH"))
        res = res + params["bd"][None, :, None]
    else:
        res = x
    return jax.nn.relu(h2 + res)


if __name__ == "__main__":
    key = jax.random.PRNGKey(0)

    def check(name, x, params, K, dil, **kw):
        pad = dil * (K - 1)
        out = jax.block_until_ready(temporal_block_forward(
            x, params, kernel_size=K, dilation=dil, padding=pad, **kw))
        ref = reference_forward(x, params, kernel_size=K, dilation=dil, padding=pad)
        assert out.shape == ref.shape, f"{name} shape {out.shape} vs {ref.shape}"
        err = jnp.max(jnp.abs(out - ref))
        assert jnp.allclose(out, ref, atol=1e-2, rtol=1e-2), f"{name} max err {err}"

    # Case 1: TemporalBlock(4, 8, kernel_size=3, stride=1, dilation=2, padding=4)
    #         -> 1x1 downsample residual, tiny L, single lane-padded tile.
    k1, k2, key = jax.random.split(key, 3)
    x1 = jax.random.normal(k1, (2, 4, 16), dtype=jnp.float32)
    p1 = make_params(k2, 4, 8, 3)
    check("case1", x1, p1, K=3, dil=2)

    # Case 2: identity residual (Cin == Cout), multi-tile carried halo, ragged tail.
    k3, k4, key = jax.random.split(key, 3)
    x2 = jax.random.normal(k3, (3, 8, 320), dtype=jnp.float32)
    p2 = make_params(k4, 8, 8, 3)
    check("case2", x2, p2, K=3, dil=4, tile_l=128)

    # Case 3: channels >= 128 -> per-tap accumulation path (no im2col slabs).
    k5, k6, key = jax.random.split(key, 3)
    x3 = jax.random.normal(k5, (2, 128, 256), dtype=jnp.float32)
    p3 = make_params(k6, 128, 128, 3)
    check("case3", x3, p3, K=3, dil=2)

    # Case 4: downsample residual + multi-tile carried halo.
    k7, k8, key = jax.random.split(key, 3)
    x4 = jax.random.normal(k7, (2, 8, 384), dtype=jnp.float32)
    p4 = make_params(k8, 8, 16, 3)
    check("case4", x4, p4, K=3, dil=4, tile_l=128)

    print("KERNEL_OK")
</pallas_src>

<mosaic_0001>
module attributes {stable_mosaic.version = 11 : i64} {
  func.func @_temporal_block_kernel(%arg0: i32, %arg1: i32, %arg2: memref<1x4x128xf32, #tpu.memory_space<vmem>>, %arg3: memref<8x12xbf16, #tpu.memory_space<vmem>>, %arg4: memref<8x1xf32, #tpu.memory_space<vmem>>, %arg5: memref<8x24xbf16, #tpu.memory_space<vmem>>, %arg6: memref<8x1xf32, #tpu.memory_space<vmem>>, %arg7: memref<8x4xbf16, #tpu.memory_space<vmem>>, %arg8: memref<8x1xf32, #tpu.memory_space<vmem>>, %arg9: memref<1x8x128xf32, #tpu.memory_space<vmem>>) attributes {dimension_semantics = [#tpu.dimension_semantics<parallel>, #tpu.dimension_semantics<arbitrary>], iteration_bounds = array<i64: 2, 1>, scalar_prefetch = 0 : i64, scratch_operands = 0 : i64, tpu.core_type = #tpu.core_type<tc>, window_params = [{transform_indices = @transform_0, window_bounds = array<i64: 1, 4, 128>}, {pipeline_mode = #tpu.pipeline_mode<synchronous>, transform_indices = @transform_1, window_bounds = array<i64: 8, 12>}, {pipeline_mode = #tpu.pipeline_mode<synchronous>, transform_indices = @transform_2, window_bounds = array<i64: 8, 1>}, {pipeline_mode = #tpu.pipeline_mode<synchronous>, transform_indices = @transform_3, window_bounds = array<i64: 8, 24>}, {pipeline_mode = #tpu.pipeline_mode<synchronous>, transform_indices = @transform_4, window_bounds = array<i64: 8, 1>}, {pipeline_mode = #tpu.pipeline_mode<synchronous>, transform_indices = @transform_5, window_bounds = array<i64: 8, 4>}, {pipeline_mode = #tpu.pipeline_mode<synchronous>, transform_indices = @transform_6, window_bounds = array<i64: 8, 1>}, {transform_indices = @transform_7, window_bounds = array<i64: 1, 8, 128>}]} {
    %c0 = arith.constant 0 : index
    %c0_0 = arith.constant 0 : index
    %0 = vector.load %arg3[%c0, %c0_0] : memref<8x12xbf16, #tpu.memory_space<vmem>>, vector<8x12xbf16>
    %c0_1 = arith.constant 0 : index
    %c0_2 = arith.constant 0 : index
    %1 = vector.load %arg4[%c0_1, %c0_2] : memref<8x1xf32, #tpu.memory_space<vmem>>, vector<8x1xf32>
    %c0_3 = arith.constant 0 : index
    %c0_4 = arith.constant 0 : index
    %2 = vector.load %arg5[%c0_3, %c0_4] : memref<8x24xbf16, #tpu.memory_space<vmem>>, vector<8x24xbf16>
    %c0_5 = arith.constant 0 : index
    %c0_6 = arith.constant 0 : index
    %3 = vector.load %arg6[%c0_5, %c0_6] : memref<8x1xf32, #tpu.memory_space<vmem>>, vector<8x1xf32>
    %c0_7 = arith.constant 0 : index
    %c0_8 = arith.constant 0 : index
    %4 = vector.load %arg7[%c0_7, %c0_8] : memref<8x4xbf16, #tpu.memory_space<vmem>>, vector<8x4xbf16>
    %c0_9 = arith.constant 0 : index
    %c0_10 = arith.constant 0 : index
    %5 = vector.load %arg8[%c0_9, %c0_10] : memref<8x1xf32, #tpu.memory_space<vmem>>, vector<8x1xf32>
    %c0_11 = arith.constant 0 : index
    %c0_12 = arith.constant 0 : index
    %c0_13 = arith.constant 0 : index
    %6 = vector.load %arg2[%c0_11, %c0_12, %c0_13] : memref<1x4x128xf32, #tpu.memory_space<vmem>>, vector<1x4x128xf32>
    %7 = vector.shape_cast %6 : vector<1x4x128xf32> to vector<4x128xf32>
    %8 = arith.truncf %7 : vector<4x128xf32> to vector<4x128xbf16>
    %cst = arith.constant 0.000000e+00 : bf16
    %9 = vector.broadcast %cst : bf16 to vector<4x4xbf16>
    %10 = tpu.concatenate %9, %8 in 1 : vector<4x4xbf16>, vector<4x128xbf16> -> vector<4x132xbf16>
    %11 = vector.extract_strided_slice %10 {offsets = [0, 0], sizes = [4, 128], strides = [1, 1]} : vector<4x132xbf16> to vector<4x128xbf16>
    %12 = vector.extract_strided_slice %10 {offsets = [0, 2], sizes = [4, 128], strides = [1, 1]} : vector<4x132xbf16> to vector<4x128xbf16>
    %13 = vector.extract_strided_slice %10 {offsets = [0, 4], sizes = [4, 128], strides = [1, 1]} : vector<4x132xbf16> to vector<4x128xbf16>
    %14 = tpu.concatenate %11, %12, %13 in 0 : vector<4x128xbf16>, vector<4x128xbf16>, vector<4x128xbf16> -> vector<12x128xbf16>
    %cst_14 = arith.constant dense<0.000000e+00> : vector<8x128xf32>
    %15 = tpu.matmul %0, %14, %cst_14 {dimension_numbers = #tpu.dot_dimension_numbers<[1], [0], [0], [1], [0, 0, 1, 1], [], []>} : vector<8x12xbf16>, vector<12x128xbf16>, vector<8x128xf32> -> vector<8x128xf32>
    %16 = vector.broadcast %1 : vector<8x1xf32> to vector<8x128xf32>
    %17 = arith.addf %15, %16 : vector<8x128xf32>
    %cst_15 = arith.constant 0.000000e+00 : f32
    %18 = vector.broadcast %cst_15 : f32 to vector<8x128xf32>
    %19 = arith.maximumf %17, %18 : vector<8x128xf32>
    %20 = arith.truncf %19 : vector<8x128xf32> to vector<8x128xbf16>
    %cst_16 = arith.constant 0.000000e+00 : bf16
    %21 = vector.broadcast %cst_16 : bf16 to vector<8x4xbf16>
    %22 = tpu.concatenate %21, %20 in 1 : vector<8x4xbf16>, vector<8x128xbf16> -> vector<8x132xbf16>
    %23 = vector.extract_strided_slice %22 {offsets = [0, 0], sizes = [8, 128], strides = [1, 1]} : vector<8x132xbf16> to vector<8x128xbf16>
    %24 = vector.extract_strided_slice %22 {offsets = [0, 2], sizes = [8, 128], strides = [1, 1]} : vector<8x132xbf16> to vector<8x128xbf16>
    %25 = vector.extract_strided_slice %22 {offsets = [0, 4], sizes = [8, 128], strides = [1, 1]} : vector<8x132xbf16> to vector<8x128xbf16>
    %26 = tpu.concatenate %23, %24, %25 in 0 : vector<8x128xbf16>, vector<8x128xbf16>, vector<8x128xbf16> -> vector<24x128xbf16>
    %cst_17 = arith.constant dense<0.000000e+00> : vector<8x128xf32>
    %27 = tpu.matmul %2, %26, %cst_17 {dimension_numbers = #tpu.dot_dimension_numbers<[1], [0], [0], [1], [0, 0, 1, 1], [], []>} : vector<8x24xbf16>, vector<24x128xbf16>, vector<8x128xf32> -> vector<8x128xf32>
    %28 = vector.broadcast %3 : vector<8x1xf32> to vector<8x128xf32>
    %29 = arith.addf %27, %28 : vector<8x128xf32>
    %cst_18 = arith.constant 0.000000e+00 : f32
    %30 = vector.broadcast %cst_18 : f32 to vector<8x128xf32>
    %31 = arith.maximumf %29, %30 : vector<8x128xf32>
    %cst_19 = arith.constant dense<0.000000e+00> : vector<8x128xf32>
    %32 = tpu.matmul %4, %8, %cst_19 {dimension_numbers = #tpu.dot_dimension_numbers<[1], [0], [0], [1], [0, 0, 1, 1], [], []>} : vector<8x4xbf16>, vector<4x128xbf16>, vector<8x128xf32> -> vector<8x128xf32>
    %33 = vector.broadcast %5 : vector<8x1xf32> to vector<8x128xf32>
    %34 = arith.addf %32, %33 : vector<8x128xf32>
    %35 = arith.addf %31, %34 : vector<8x128xf32>
    %cst_20 = arith.constant 0.000000e+00 : f32
    %36 = vector.broadcast %cst_20 : f32 to vector<8x128xf32>
    %37 = arith.maximumf %35, %36 : vector<8x128xf32>
    %c0_21 = arith.constant 0 : index
    %c0_22 = arith.constant 0 : index
    %c0_23 = arith.constant 0 : index
    %38 = vector.load %arg9[%c0_21, %c0_22, %c0_23] : memref<1x8x128xf32, #tpu.memory_space<vmem>>, vector<1x8x128xf32>
    %39 = vector.shape_cast %38 : vector<1x8x128xf32> to vector<8x128xf32>
    %40 = vector.shape_cast %37 : vector<8x128xf32> to vector<1x8x128xf32>
    tpu.vector_store %arg9[%c0_21, %c0_22, %c0_23], %40 {strides = array<i32>} : memref<1x8x128xf32, #tpu.memory_space<vmem>>, vector<1x8x128xf32>,
    return
  }
  func.func @transform_0(%arg0: i32, %arg1: i32) -> (i32, i32, i32) {
    %c0_i32 = arith.constant 0 : i32
    %c0_i32_0 = arith.constant 0 : i32
    return %arg0, %c0_i32, %arg1 : i32, i32, i32
  }
  func.func @transform_1(%arg0: i32, %arg1: i32) -> (i32, i32) {
    %c0_i32 = arith.constant 0 : i32
    %c0_i32_0 = arith.constant 0 : i32
    %c0_i32_1 = arith.constant 0 : i32
    return %c0_i32, %c0_i32_0 : i32, i32
  }
  func.func @transform_2(%arg0: i32, %arg1: i32) -> (i32, i32) {
    %c0_i32 = arith.constant 0 : i32
    %c0_i32_0 = arith.constant 0 : i32
    %c0_i32_1 = arith.constant 0 : i32
    return %c0_i32, %c0_i32_0 : i32, i32
  }
  func.func @transform_3(%arg0: i32, %arg1: i32) -> (i32, i32) {
    %c0_i32 = arith.constant 0 : i32
    %c0_i32_0 = arith.constant 0 : i32
    %c0_i32_1 = arith.constant 0 : i32
    return %c0_i32, %c0_i32_0 : i32, i32
  }
  func.func @transform_4(%arg0: i32, %arg1: i32) -> (i32, i32) {
    %c0_i32 = arith.constant 0 : i32
    %c0_i32_0 = arith.constant 0 : i32
    %c0_i32_1 = arith.constant 0 : i32
    return %c0_i32, %c0_i32_0 : i32, i32
  }
  func.func @transform_5(%arg0: i32, %arg1: i32) -> (i32, i32) {
    %c0_i32 = arith.constant 0 : i32
    %c0_i32_0 = arith.constant 0 : i32
    %c0_i32_1 = arith.constant 0 : i32
    return %c0_i32, %c0_i32_0 : i32, i32
  }
  func.func @transform_6(%arg0: i32, %arg1: i32) -> (i32, i32) {
    %c0_i32 = arith.constant 0 : i32
    %c0_i32_0 = arith.constant 0 : i32
    %c0_i32_1 = arith.constant 0 : i32
    return %c0_i32, %c0_i32_0 : i32, i32
  }
  func.func @transform_7(%arg0: i32, %arg1: i32) -> (i32, i32, i32) {
    %c0_i32 = arith.constant 0 : i32
    %c0_i32_0 = arith.constant 0 : i32
    return %arg0, %c0_i32, %arg1 : i32, i32, i32
  }
}

</mosaic_0001>

<bundles_post_ra>
// kernel: tpu_custom_call.1
= control target key start
LH: loop header
LB: loop body
LE: loop exit
PB: predicated region body
PF: predicated region fallthrough
CT: control target
= control target key end

     0   :  { %12 = vsyncpa [#allocation3], 0  ;;  %s999_s0 = inlined_call_operand.vmem [shape: f32[2,4,128], index: 0, kind: input, shape index: {}]   ;;  %s1000_s1 = inlined_call_operand.vmem [shape: bf16[8,12], index: 1, kind: input, shape index: {}]   ;;  %s1001_s2 = inlined_call_operand.vmem [shape: f32[8,1], index: 2, kind: input, shape index: {}]   ;;  %s1002_s3 = inlined_call_operand.vmem [shape: bf16[8,24], index: 3, kind: input, shape index: {}]   ;;  %s1003_s4 = inlined_call_operand.vmem [shape: f32[8,1], index: 4, kind: input, shape index: {}]   ;;  %s1004_s5 = inlined_call_operand.vmem [shape: bf16[8,4], index: 5, kind: input, shape index: {}]   ;;  %s1005_s6 = inlined_call_operand.vmem [shape: f32[8,1], index: 6, kind: input, shape index: {}]   ;;  %s1006_s7 = inlined_call_operand.hbm [shape: f32[2,8,128], index: 7, kind: output, shape index: {}]  }
   0x1   :  { %14 = vsyncpa [#allocation3 + $0x1], 0  ;;  %s837_s24 = smov 0   ;;  %s839_s25 = smov 0  }
   0x2   :  { %s841_s26 = smov 0   ;;  %s843_s27 = smov 0  }
   0x3   :  { %s845_s28 = smov 0   ;;  %s847_s29 = smov 0  }
   0x4 LB: > { %s606_s30 = sadd.s32 4294967295, %s788_s29   ;;  %s607_s8 = sadd.s32 4294967294, %s788_s29   ;;  %s788_s29 = sphi %s847_s29, %s20_s29   ;;  %s784_s28 = sphi %s845_s28, %s1013_s28   ;;  %s780_s27 = sphi %s843_s27, %s1012_s27   ;;  %s776_s26 = sphi %s841_s26, %s1011_s26   ;;  %s772_s25 = sphi %s839_s25, %s1010_s25   ;;  %s768_s24 = sphi %s837_s24, %s1009_s24  }
   0x5   : > { %s32_s9 = sadd.s32 1, %s784_s28  ;;  %s195_s10 = sadd.s32 1, %s776_s26 }
   0x6   : > { %p34_p0 = scmp.ge.s32.totalorder %s32_s9, 2  ;;  %p205_p1 = scmp.ne.s32.totalorder %s776_s26, %s772_s25 }
   0x7   : > { %p206_p2 = scmp.eq.s32.totalorder %s606_s30, 1  ;;  %p211_p3 = scmp.ne.s32.totalorder %s772_s25, %s768_s24 }
   0x8   : > { %s1015_s9 = smov (%p34_p0, %s32_s9), 0  ;;  %p212_p5 = scmp.eq.s32.totalorder %s607_s8, 1 }
   0x9   : > { %p877_p4 = por %p206_p2, %p205_p1  ;;  %s190_s12 = ssub.s32 %s784_s28, %s1015_s9 }
   0xa   : > { %p610_p6 = scmp.ge.s32.totalorder %s788_s29, 1  ;;  %p193_p7 = scmp.eq.s32.totalorder %s190_s12, 0 }
   0xb   : > { %p884_p8 = por %p212_p5, %p211_p3  ;;  %p258_p9 = scmp.lt.s32.totalorder %s788_s29, 3 }
   0xc   : > { %s890_s14 = scalar_select %p193_p7, %s776_s26, %s195_s10  }
   0xd   : > { %p259_p10 = pnand %p610_p6, %p258_p9 }
   0xe   : > { %p292_p11 = scmp.lt.s32.totalorder (!%p259_p10), %s780_s27, 1  ;;  %s790_s20 = smov (!%p259_p10), 4   ;;  %v791_v2 = vmov (!%p259_p10), 0.0   ;;  %vm311_vm0 = vcmask (!%p259_p10), 31744   ;;  %vm792_vm1 = vmmov (!%p259_p10), 0   ;;  %v793_v7 = vmov (!%p259_p10), 0  }
   0xf   : > { %262 = sbr.rel (%p259_p10) target bundleno = 966 (0x3c6), region = 48  ;;  %627 = vmatprep.subr.bf16.mxu0 (!%p259_p10), %v791_v2  ;;  %633 = vmatprep.subr.bf16.mxu1 (!%p259_p10), %v791_v2  ;;  %s794_s21 = smov (!%p259_p10), 126   ;;  %v301_v10 = vld [vmem:[%s1001_s2] sm:$0xff] (!%p259_p10)  ;;  %vm322_vm2 = vcmask (!%p259_p10), 1031168   ;;  %vm330_vm3 = vcmask (!%p259_p10), 1014784   ;;  %vm332_vm4 = vcmask (!%p259_p10), 1041408  }
  0x10   : > { %629 = vmatprep.mubr.msk.bf16.mxu0 (!%p259_p10), %vm792_vm1, %v791_v2  ;;  %637 = vmatprep.mubr.msk.bf16.mxu1 (!%p259_p10), %vm792_vm1, %v791_v2  ;;  %s795_s22 = smov (!%p259_p10), 124   ;;  %vm335_vm5 = vcmask (!%p259_p10), 1043456   ;;  %vm347_vm6 = vcmask (!%p259_p10), 1045504   ;;  %v300_v20 = vld [vmem:[%s1000_s1] sm:$0xf] (!%p259_p10)  ;;  %vm343_vm7 = vcmask (!%p259_p10), 97280  }
  0x11   : > { %708 = vset.pattern.permute.xlu1 (!%p259_p10), %v793_v7  ;;  %709 = vset.pattern.permute.xlu0 (!%p259_p10), %v793_v7  ;;  %v304_v30 = vld [vmem:[%s1004_s5] sm:$0xf] (!%p259_p10)  ;;  %vm418_vm8 = vcmask (!%p259_p10), 195584   ;;  %s617_s30 = sshll.u32 (!%p259_p10), %s780_s27, 7 }
  0x12   : > { %v303_v35 = vld [vmem:[%s1003_s4] sm:$0xff] (!%p259_p10) }
  0x13   : > { %v305_v36 = vld [vmem:[%s1005_s6] sm:$0xff] (!%p259_p10) }
  0x14   : > { %v302_v45 = vld [vmem:[%s1002_s3] sm:$0xf] (!%p259_p10) }
  0x16   : > { %s293_s15 = scalar_select %p292_p11, %s780_s27, 1 }
  0x17   : > { %s796_s27 = smov [#allocation2]  }
  0x18   : > { %s612_s16 = sshll.u32 %s293_s15, 2 }
  0x19   : > { %s298_s19 = scalar_lea.vmem %s999_s0, %s612_s16  ;;  %s952_s16 = scalar_lea.hbm %s1006_s7, %s617_s30 }
  0x1a   : > { %v306_v0 = vld [vmem:[%s298_s19] sm:$0xf]  ;;  %s714_s19 = sshll.u32 %s796_s27, 4  ;;  %s715_s19 = int_to_ptr.vmem [resolvable:$false] %s714_s19 }
  0x1b   : > { %v307_v1 = vpack.c.bf16 %v306_v0, %v306_v0 }
  0x1d   : > { %309 = vrot.lane.b32.xlu0 %v307_v1, %s790_s20  ;;  %v475_v29 = vsel %vm332_vm4, %v307_v1, 0 }
  0x8f   : > { %v310_v3 = vpop.permute.xlu0 %309 }
  0x90   : > { %v314_v4 = vsel %vm311_vm0, 0, %v310_v3  ;;  %v317_v5 = vrot.slane %v310_v3, 6  ;;  %v325_v9 = vrot.slane %v310_v3, 4 }
  0x91   : > { %v316_v6 = vrot.slane %v314_v4, 6  ;;  %v324_v8 = vrot.slane %v314_v4, 4 }
  0x92   : > { %320 = vrot.lane.b32.xlu1 %v317_v5, %s794_s21 }
  0x93   : > { %318 = vrot.lane.b32.xlu0 %v316_v6, %s794_s21 }
  0x96   : > { %326 = vrot.lane.b32.xlu1 %v324_v8, %s795_s22 }
  0x97   : > { %328 = vrot.lane.b32.xlu0 %v325_v9, %s795_s22 }
  0x9a   : > { %340 = vperm.xlu1 %708, %v301_v10  }
 0x104   : > { %v321_v11 = vpop.permute.xlu1 %320 }
 0x105   : > { %v319_v12 = vpop.permute.xlu0 %318 }
 0x106   : > { %v323_v13 = vsel %vm322_vm2, %v319_v12, %v321_v11 }
 0x107   : > { %v334_v17 = vsel %vm332_vm4, %v314_v4, %v323_v13 }
 0x108   : > { %v327_v14 = vpop.permute.xlu1 %326 }
 0x109   : > { %v329_v15 = vpop.permute.xlu0 %328 }
 0x10a   : > { %v331_v16 = vsel %vm330_vm3, %v327_v14, %v329_v15 }
 0x10b   : > { %v337_v18 = vsel %vm335_vm5, %v334_v17, %v331_v16 }
 0x10c   : > { %v348_v19 = vsel %vm347_vm6, %v337_v18, 0 }
 0x10d   : > { %628 = vmatpush3.bf16.msra.mxu0 %v348_v19 }
 0x10e   : > { %641 = vmatprep.subr.bf16.mxu0 %v791_v2 }
 0x110   : > { %630 = vmatmul.mubr.msk.bf16.vlgmr.msra.gmra.mrb[0].mxu0 %vm343_vm7, %v300_v20 }
 0x111   : > { %643 = vmatprep.mubr.msk.bf16.mxu0 %vm792_vm1, %v791_v2  ;;  %642 = vmatpush3.bf16.msra.mxu0 %v475_v29 }
 0x118   : > { %644 = vmatmul.mubr.msk.bf16.vlgmr.msra.gmra.mrb[4].mxu0 %vm311_vm0, %v304_v30 }
 0x119   : > { %v341_v21 = vpop.permute.xlu1 %340 }
 0x1e3   : > { %v384_v22 = vpop.f32.mrb[0].mxu0 }
 0x1e4   : > { %v385_v23 = vadd.f32 %v384_v22, %v341_v21  ;;  %v631_v24 = vpop.f32.mrb[1].mxu0 }
 0x1e5   : > { %v387_v25 = vpop.f32.mrb[2].mxu0 }
 0x1e6   : > { %v390_v26 = vmax.f32 %v385_v23, 0.0  ;;  %v632_v27 = vpop.f32.mrb[3].mxu0 }
 0x1e8   : > { %v391_v28 = vpack.c.bf16 %v390_v26, %v390_v26 }
 0x1ea   : > { %393 = vrot.lane.b32.xlu0 %v391_v28, %s790_s20  ;;  %s716_s20 = scalar_lea.vmem %s715_s19, 256 }
 0x1eb   : > { %v511_v46 = vpop.f32.mrb[4].mxu0 }
 0x1ec   : > { %v645_v47 = vpop.f32.mrb[5].mxu0 }
 0x1ed   : > { %v514_v48 = vpop.f32.mrb[6].mxu0 }
 0x1ee   : > { %v646_v49 = vpop.f32.mrb[7].mxu0 }
 0x25c   : > { %v394_v31 = vpop.permute.xlu0 %393 }
 0x25d   : > { %v396_v32 = vsel %vm311_vm0, 0, %v394_v31  ;;  %v399_v33 = vrot.slane %v394_v31, 4 }
 0x25e   : > { %v398_v34 = vrot.slane %v396_v32, 4 }
 0x25f   : > { %402 = vrot.lane.b32.xlu0 %v399_v33, %s794_s21 }
 0x260   : > { %400 = vrot.lane.b32.xlu1 %v398_v34, %s794_s21 }
 0x263   : > { %407 = vrot.lane.b32.xlu0 %v394_v31, %s795_s22 }
 0x264   : > { %405 = vrot.lane.b32.xlu1 %v396_v32, %s795_s22  ;;  %s289_s22 = sand.u32 1, %s772_s25  }
 0x265   : > { %s611_s23 = sshll.u32 %s289_s22, 3  ;;  %s521_s17 = scalar_lea.sflag [#allocation3], %s289_s22 }
 0x266   : > { %s291_s8 = scalar_lea.vmem [#allocation2], %s611_s23 }
 0x267   : > { %468 = vperm.xlu0 %709, %v305_v36   ;;  %s535_s10 = sshll.u32 %s291_s8, 4  ;;  %s954_s10 = int_to_ptr.vmem [resolvable:$true] %s535_s10 }
 0x268   : > { %415 = vperm.xlu1 %708, %v303_v35   ;;  %s710_s18 = scalar_lea.vmem %s954_s10, 128  ;;  %p717_p1 = scmp.lt.s32.totalorder %s954_s10, %s715_s19 }
 0x269   : > { %p711_p12 = scmp.ne.s32.totalorder %s954_s10, %s710_s18  ;;  %p718_p2 = scmp.lt.s32.totalorder %s716_s20, %s710_s18 }
 0x26b   : > { %p712_p13 = pnand %p711_p12, %p877_p4  ;;  %p719_p3 = por %p718_p2, %p717_p1 }
 0x26d   : > { %p713_p0 = pneg %p712_p13 }
 0x26f   : > { %p720_p5 = pnand %p719_p3, %p713_p0 }
 0x2d1   : > { %v403_v37 = vpop.permute.xlu0 %402 }
 0x2d2   : > { %v401_v38 = vpop.permute.xlu1 %400 }
 0x2d3   : > { %v404_v39 = vsel %vm322_vm2, %v401_v38, %v403_v37 }
 0x2d4   : > { %v411_v40 = vsel %vm335_vm5, %v396_v32, %v404_v39 }
 0x2d5   : > { %634 = vmatpush3.bf16.msra.mxu1 %v411_v40  ;;  %v408_v41 = vpop.permute.xlu0 %407 }
 0x2d6   : > { %v406_v42 = vpop.permute.xlu1 %405  ;;  %635 = vmatprep.subr.bf16.mxu1 %v791_v2 }
 0x2d7   : > { %v409_v43 = vsel %vm330_vm3, %v406_v42, %v408_v41 }
 0x2d8   : > { %v423_v44 = vsel %vm335_vm5, %v409_v43, 0 }
 0x2d9   : > { %636 = vmatpush3.bf16.msra.mxu1 %v423_v44 }
 0x2dc   : > { %638 = vmatmul.mubr.msk.bf16.vlgmr.msra.gmra.mrb[0].mxu1 %vm418_vm8, %v302_v45 }
 0x2e6   : > { %v469_v50 = vpop.permute.xlu0 %468 }
 0x2e7   : > { %v416_v51 = vpop.permute.xlu1 %415  ;;  %v512_v55 = vadd.f32 %v511_v46, %v469_v50 }
 0x3af   : > { %v459_v52 = vpop.f32.mrb[0].mxu1 }
 0x3b0   : > { %v460_v53 = vadd.f32 %v459_v52, %v416_v51  ;;  %v639_v54 = vpop.f32.mrb[1].mxu1 }
 0x3b1   : > { %v462_v56 = vpop.f32.mrb[2].mxu1 }
 0x3b2   : > { %v465_v57 = vmax.f32 %v460_v53, 0.0  ;;  %v640_v58 = vpop.f32.mrb[3].mxu1 }
 0x3b4   : > { %v517_v59 = vadd.f32 %v512_v55, %v465_v57 }
 0x3b6   : > { %v518_v60 = vmax.f32 %v517_v59, 0.0 }
 0x3b8   : > { %519 = vst [vmem:[%s291_s8] sm:$0xff] %v518_v60 }
 0x3b9   : > { %723 = shalt.err (!%p720_p5)
}
 0x3ba   : > { %s724_s21 = scalar_lea.hbm %s952_s16, 128  ;;  %s728_s30 = scalar_lea.hbm %s1006_s7, 256 }
 0x3bb   : > { %p725_p6 = scmp.ne.s32.totalorder %s952_s16, %s724_s21  ;;  %p729_p10 = scmp.lt.u32.totalorder %s952_s16, %s1006_s7 }
 0x3bc   : > { %p730_p11 = scmp.lt.u32.totalorder %s728_s30, %s724_s21  ;;  %p732_p13 = scmp.lt.u32.totalorder %s724_s21, %s952_s16 }
 0x3bd   : > { %p726_p7 = pnand %p725_p6, %p877_p4 }
 0x3be   : > { %p731_p12 = por %p730_p11, %p729_p10 }
 0x3bf   : > { %p727_p9 = pneg %p726_p7 }
 0x3c0   : > { %p733_p0 = por %p732_p13, %p731_p12 }
 0x3c2   : > { %p734_p1 = pnand %p733_p0, %p727_p9 }
 0x3c4   : > { %737 = shalt.err (!%p734_p1)
}
 0x3c5   : > { %647 = dma.vmem_to_hbm [thread:$0]  (%p877_p4), %s954_s10, 128, %s952_s16, %s521_s17  }
 0x3c6 PF: > { %p653_p2 = scmp.ge.s32.totalorder %s788_s29, 2  ;;  %s547_s15 = sand.u32 1, %s768_s24  }
 0x3c7   : > { %s548_s18 = scalar_lea.sflag [#allocation3], %s547_s15 }
 0x3c8   : > { %p650_p3 = pnand %p653_p2, %p884_p8 }
 0x3ca   : > { %763 = dma.done.wait (!%p650_p3), %s548_s18, 128  }
 0x3cb   : > { %765 = vsyncadd (!%p650_p3), %s548_s18, 4294967168  ;;  %s20_s29 = sadd.s32 1, %s788_s29   ;;  %s1009_s24 = smov %s772_s25 }
 0x3cc   : > { %p17_p5 = scmp.ge.s32.totalorder %s20_s29, 4   ;;  %s1010_s25 = smov %s776_s26 }
 0x3cd   : > { %s1011_s26 = smov %s890_s14  ;;  %s1012_s27 = smov %s784_s28 }
 0x3ce   : > { %s1013_s28 = smov %s1015_s9  ;;  %19 = sbr.rel (!%p17_p5) target bundleno = 4 (0x4), region = 83 }
 0x3d5   :  { %553 = vsyncpa [#allocation3], 1 }
 0x3d6   :  { %555 = vsyncpa [#allocation3 + $0x1], 1 }

</bundles_post_ra>
